<compile_context>
chip_gen: v6e
topology: v6e:2x2x1
jax: 0.10.0
libtpu: 0.0.40
codegen_flags: <defaults>
</compile_context>

<pallas_src>
import jax
import jax.numpy as jnp
from jax.experimental import pallas as pl
from jax.experimental.pallas import tpu as pltpu


def _round_up(x, m):
    return (x + m - 1) // m * m


def critic_q_kernel(obs_ref, act_ref, w1o_ref, w1a_ref, b1_ref,
                    w2_ref, b2_ref, w3_ref, b3_ref, q_ref):
    """One batch tile of the fused MLP Q-critic.

    obs_ref : [tm, obs_dim] bf16      act_ref : [tm, act_dim] bf16
    w1o     : [obs_dim, Hp] bf16      w1a     : [act_dim, Hp] bf16
    b1      : [1, Hp] f32
    w2      : [Hp, Hp] bf16           b2      : [1, Hp] f32
    w3      : [1, Hp] f32 (head row)  b3      : [1, 1]  f32 (SMEM scalar)
    q_ref   : [tm, 1] f32
    """
    # Layer 1: fused concat -> split matmul on the MXU, f32 accumulation.
    h1 = jnp.dot(obs_ref[...], w1o_ref[...], preferred_element_type=jnp.float32)
    h1 = h1 + jnp.dot(act_ref[...], w1a_ref[...],
                      preferred_element_type=jnp.float32)
    h1 = jnp.maximum(h1 + b1_ref[...], 0.0)

    # Layer 2: bf16 matmul on the MXU, f32 accumulation, ReLU on the VPU.
    h2 = jnp.dot(h1.astype(jnp.bfloat16), w2_ref[...],
                 preferred_element_type=jnp.float32)
    h2 = jnp.maximum(h2 + b2_ref[...], 0.0)

    # Output head: VPU multiply + cross-lane reduction instead of an N=1 MXU
    # matmul (the [tm, 1] store is only tm*4 bytes per tile -> negligible).
    q = jnp.sum(h2 * w3_ref[...], axis=-1, keepdims=True)
    q_ref[...] = (q + b3_ref[0, 0]).astype(q_ref.dtype)


def critic_q_forward(observation, action, params, *, tm=1024):
    """Q(obs, act) via a single gridded pallas_call."""
    B, obs_dim = observation.shape
    act_dim = action.shape[1]
    w1, b1, w2, b2, w3, b3 = params
    H = w1.shape[1]
    Hp = _round_up(H, 128)          # lane-dense hidden dim (exact zero-padding)

    # Batch tile: as large as available (per-step overhead amortization),
    # rounded to 16 so bf16 sublane packing and (8,128) tiling are satisfied.
    tm = min(tm, _round_up(B, 16))
    B_pad = _round_up(B, tm)

    # One-time (trace-time) weight preparation: split W1 rows, pad the hidden
    # dim, cast matmul operands to bf16; biases / head row stay f32.
    w1p = jnp.pad(w1, ((0, 0), (0, Hp - H))).astype(jnp.bfloat16)
    w1o = w1p[:obs_dim]
    w1a = w1p[obs_dim:]
    b1p = jnp.pad(b1, ((0, 0), (0, Hp - H))).astype(jnp.float32)
    w2p = jnp.pad(w2, ((0, Hp - H), (0, Hp - H))).astype(jnp.bfloat16)
    b2p = jnp.pad(b2, ((0, 0), (0, Hp - H))).astype(jnp.float32)
    w3row = jnp.pad(w3, ((0, Hp - H), (0, 0))).reshape(1, Hp).astype(jnp.float32)
    b3p = b3.reshape(1, 1).astype(jnp.float32)

    # Pad the batch so the last tile is full (zero rows are sliced off below).
    obs_p = jnp.pad(observation.astype(jnp.bfloat16), ((0, B_pad - B), (0, 0)))
    act_p = jnp.pad(action.astype(jnp.bfloat16), ((0, B_pad - B), (0, 0)))

    grid = (B_pad // tm,)
    const = lambda i: (0, 0)        # weights: VMEM-resident across the grid

    flops = 2 * B_pad * (obs_dim * Hp + act_dim * Hp + Hp * Hp + Hp)
    bytes_accessed = (
        2 * (obs_p.size + act_p.size + w1o.size + w1a.size + w2p.size)
        + 4 * (b1p.size + b2p.size + w3row.size + 1 + B_pad))

    out = pl.pallas_call(
        critic_q_kernel,
        out_shape=jax.ShapeDtypeStruct((B_pad, 1), jnp.float32),
        grid_spec=pltpu.PrefetchScalarGridSpec(
            num_scalar_prefetch=0,
            grid=grid,
            in_specs=[
                pl.BlockSpec((tm, obs_dim), lambda i: (i, 0)),   # obs tile
                pl.BlockSpec((tm, act_dim), lambda i: (i, 0)),   # act tile
                pl.BlockSpec((obs_dim, Hp), const),              # W1 (obs rows)
                pl.BlockSpec((act_dim, Hp), const),              # W1 (act rows)
                pl.BlockSpec((1, Hp), const),                    # b1
                pl.BlockSpec((Hp, Hp), const),                   # W2
                pl.BlockSpec((1, Hp), const),                    # b2
                pl.BlockSpec((1, Hp), const),                    # w3 row
                pl.BlockSpec(memory_space=pltpu.MemorySpace.SMEM),  # b3 scalar
            ],
            out_specs=pl.BlockSpec((tm, 1), lambda i: (i, 0)),
        ),
        compiler_params=pltpu.CompilerParams(
            dimension_semantics=("parallel",)),
        cost_estimate=pl.CostEstimate(
            flops=flops, transcendentals=0, bytes_accessed=bytes_accessed),
    )(obs_p, act_p, w1o, w1a, b1p, w2p, b2p, w3row, b3p)

    return out[:B]


def init_params(key, obs_dim, act_dim, hidden):
    """Deterministic synthetic parameters (PyTorch-Linear-like scaling)."""
    d = obs_dim + act_dim
    k1, k2, k3, k4, k5, k6 = jax.random.split(key, 6)

    def unif(k, shape, fan_in):
        bound = 1.0 / jnp.sqrt(float(fan_in))
        return jax.random.uniform(k, shape, jnp.float32, -bound, bound)

    w1 = unif(k1, (d, hidden), d)
    b1 = unif(k2, (1, hidden), d)
    w2 = unif(k3, (hidden, hidden), hidden)
    b2 = unif(k4, (1, hidden), hidden)
    w3 = unif(k5, (hidden, 1), hidden)
    b3 = unif(k6, (1, 1), hidden)
    return (w1, b1, w2, b2, w3, b3)


def reference_forward(observation, action, params):
    """Pure-JAX reference matching the kernel's bf16-matmul / f32-accum recipe."""
    w1, b1, w2, b2, w3, b3 = params
    x = jnp.concatenate([observation, action], axis=-1)
    h1 = jnp.dot(x.astype(jnp.bfloat16), w1.astype(jnp.bfloat16),
                 preferred_element_type=jnp.float32)
    h1 = jnp.maximum(h1 + b1, 0.0)
    h2 = jnp.dot(h1.astype(jnp.bfloat16), w2.astype(jnp.bfloat16),
                 preferred_element_type=jnp.float32)
    h2 = jnp.maximum(h2 + b2, 0.0)
    return h2 @ w3 + b3            # head in f32, like the in-kernel VPU reduce


if __name__ == "__main__":
    B, OBS_DIM, ACT_DIM, HIDDEN = 8, 24, 8, 32

    key = jax.random.PRNGKey(0)
    k_obs, k_act, k_params = jax.random.split(key, 3)

    observation = jax.random.normal(k_obs, (B, OBS_DIM), jnp.float32)
    action = jax.random.normal(k_act, (B, ACT_DIM), jnp.float32)
    params = init_params(k_params, OBS_DIM, ACT_DIM, HIDDEN)

    q = critic_q_forward(observation, action, params)
    q = jax.block_until_ready(q)

    q_ref = reference_forward(observation, action, params)
    assert q.shape == (B, 1)
    assert jnp.allclose(q, q_ref, atol=1e-2, rtol=1e-2), "mismatch vs reference"

    print("KERNEL_OK")
</pallas_src>

<mosaic_0001>
module attributes {stable_mosaic.version = 11 : i64} {
  func.func @critic_q_kernel(%arg0: i32, %arg1: memref<16x24xbf16, #tpu.memory_space<vmem>>, %arg2: memref<16x8xbf16, #tpu.memory_space<vmem>>, %arg3: memref<24x128xbf16, #tpu.memory_space<vmem>>, %arg4: memref<8x128xbf16, #tpu.memory_space<vmem>>, %arg5: memref<1x128xf32, #tpu.memory_space<vmem>>, %arg6: memref<128x128xbf16, #tpu.memory_space<vmem>>, %arg7: memref<1x128xf32, #tpu.memory_space<vmem>>, %arg8: memref<1x128xf32, #tpu.memory_space<vmem>>, %arg9: memref<1x1xf32, #tpu.memory_space<smem>>, %arg10: memref<16x1xf32, #tpu.memory_space<vmem>>) attributes {dimension_semantics = [#tpu.dimension_semantics<parallel>], iteration_bounds = array<i64: 1>, scalar_prefetch = 0 : i64, scratch_operands = 0 : i64, tpu.core_type = #tpu.core_type<tc>, window_params = [{transform_indices = @transform_0, window_bounds = array<i64: 16, 24>}, {transform_indices = @transform_1, window_bounds = array<i64: 16, 8>}, {pipeline_mode = #tpu.pipeline_mode<synchronous>, transform_indices = @transform_2, window_bounds = array<i64: 24, 128>}, {pipeline_mode = #tpu.pipeline_mode<synchronous>, transform_indices = @transform_3, window_bounds = array<i64: 8, 128>}, {pipeline_mode = #tpu.pipeline_mode<synchronous>, transform_indices = @transform_4, window_bounds = array<i64: 1, 128>}, {pipeline_mode = #tpu.pipeline_mode<synchronous>, transform_indices = @transform_5, window_bounds = array<i64: 128, 128>}, {pipeline_mode = #tpu.pipeline_mode<synchronous>, transform_indices = @transform_6, window_bounds = array<i64: 1, 128>}, {pipeline_mode = #tpu.pipeline_mode<synchronous>, transform_indices = @transform_7, window_bounds = array<i64: 1, 128>}, {transform_indices = @transform_8, window_bounds = array<i64: 1, 1>}, {transform_indices = @transform_9, window_bounds = array<i64: 16, 1>}]} {
    %c0 = arith.constant 0 : index
    %c0_0 = arith.constant 0 : index
    %0 = vector.load %arg1[%c0, %c0_0] : memref<16x24xbf16, #tpu.memory_space<vmem>>, vector<16x24xbf16>
    %c0_1 = arith.constant 0 : index
    %c0_2 = arith.constant 0 : index
    %1 = vector.load %arg3[%c0_1, %c0_2] : memref<24x128xbf16, #tpu.memory_space<vmem>>, vector<24x128xbf16>
    %cst = arith.constant dense<0.000000e+00> : vector<16x128xf32>
    %2 = tpu.matmul %0, %1, %cst {dimension_numbers = #tpu.dot_dimension_numbers<[1], [0], [0], [1], [0, 0, 1, 1], [], []>} : vector<16x24xbf16>, vector<24x128xbf16>, vector<16x128xf32> -> vector<16x128xf32>
    %c0_3 = arith.constant 0 : index
    %c0_4 = arith.constant 0 : index
    %3 = vector.load %arg2[%c0_3, %c0_4] : memref<16x8xbf16, #tpu.memory_space<vmem>>, vector<16x8xbf16>
    %c0_5 = arith.constant 0 : index
    %c0_6 = arith.constant 0 : index
    %4 = vector.load %arg4[%c0_5, %c0_6] : memref<8x128xbf16, #tpu.memory_space<vmem>>, vector<8x128xbf16>
    %cst_7 = arith.constant dense<0.000000e+00> : vector<16x128xf32>
    %5 = tpu.matmul %3, %4, %cst_7 {dimension_numbers = #tpu.dot_dimension_numbers<[1], [0], [0], [1], [0, 0, 1, 1], [], []>} : vector<16x8xbf16>, vector<8x128xbf16>, vector<16x128xf32> -> vector<16x128xf32>
    %6 = arith.addf %2, %5 : vector<16x128xf32>
    %c0_8 = arith.constant 0 : index
    %c0_9 = arith.constant 0 : index
    %7 = vector.load %arg5[%c0_8, %c0_9] : memref<1x128xf32, #tpu.memory_space<vmem>>, vector<1x128xf32>
    %8 = vector.broadcast %7 : vector<1x128xf32> to vector<16x128xf32>
    %9 = arith.addf %6, %8 : vector<16x128xf32>
    %cst_10 = arith.constant 0.000000e+00 : f32
    %10 = vector.broadcast %cst_10 : f32 to vector<16x128xf32>
    %11 = arith.maximumf %9, %10 : vector<16x128xf32>
    %12 = arith.truncf %11 : vector<16x128xf32> to vector<16x128xbf16>
    %c0_11 = arith.constant 0 : index
    %c0_12 = arith.constant 0 : index
    %13 = vector.load %arg6[%c0_11, %c0_12] : memref<128x128xbf16, #tpu.memory_space<vmem>>, vector<128x128xbf16>
    %cst_13 = arith.constant dense<0.000000e+00> : vector<16x128xf32>
    %14 = tpu.matmul %12, %13, %cst_13 {dimension_numbers = #tpu.dot_dimension_numbers<[1], [0], [0], [1], [0, 0, 1, 1], [], []>} : vector<16x128xbf16>, vector<128x128xbf16>, vector<16x128xf32> -> vector<16x128xf32>
    %c0_14 = arith.constant 0 : index
    %c0_15 = arith.constant 0 : index
    %15 = vector.load %arg7[%c0_14, %c0_15] : memref<1x128xf32, #tpu.memory_space<vmem>>, vector<1x128xf32>
    %16 = vector.broadcast %15 : vector<1x128xf32> to vector<16x128xf32>
    %17 = arith.addf %14, %16 : vector<16x128xf32>
    %cst_16 = arith.constant 0.000000e+00 : f32
    %18 = vector.broadcast %cst_16 : f32 to vector<16x128xf32>
    %19 = arith.maximumf %17, %18 : vector<16x128xf32>
    %c0_17 = arith.constant 0 : index
    %c0_18 = arith.constant 0 : index
    %20 = vector.load %arg8[%c0_17, %c0_18] : memref<1x128xf32, #tpu.memory_space<vmem>>, vector<1x128xf32>
    %21 = vector.broadcast %20 : vector<1x128xf32> to vector<16x128xf32>
    %22 = arith.mulf %19, %21 : vector<16x128xf32>
    %cst_19 = arith.constant dense<0.000000e+00> : vector<16xf32>
    %23 = vector.multi_reduction <add>, %22, %cst_19 [1] : vector<16x128xf32> to vector<16xf32>
    %24 = vector.shape_cast %23 : vector<16xf32> to vector<16x1xf32>
    %c0_20 = arith.constant 0 : index
    %c0_21 = arith.constant 0 : index
    %25 = memref.load %arg9[%c0_20, %c0_21] : memref<1x1xf32, #tpu.memory_space<smem>>
    %26 = vector.broadcast %25 : f32 to vector<16x1xf32>
    %27 = arith.addf %24, %26 : vector<16x1xf32>
    %c0_22 = arith.constant 0 : index
    %c0_23 = arith.constant 0 : index
    %28 = vector.load %arg10[%c0_22, %c0_23] : memref<16x1xf32, #tpu.memory_space<vmem>>, vector<16x1xf32>
    tpu.vector_store %arg10[%c0_22, %c0_23], %27 {strides = array<i32>} : memref<16x1xf32, #tpu.memory_space<vmem>>, vector<16x1xf32>,
    return
  }
  func.func @transform_0(%arg0: i32) -> (i32, i32) {
    %c0_i32 = arith.constant 0 : i32
    %c0_i32_0 = arith.constant 0 : i32
    return %arg0, %c0_i32 : i32, i32
  }
  func.func @transform_1(%arg0: i32) -> (i32, i32) {
    %c0_i32 = arith.constant 0 : i32
    %c0_i32_0 = arith.constant 0 : i32
    return %arg0, %c0_i32 : i32, i32
  }
  func.func @transform_2(%arg0: i32) -> (i32, i32) {
    %c0_i32 = arith.constant 0 : i32
    %c0_i32_0 = arith.constant 0 : i32
    %c0_i32_1 = arith.constant 0 : i32
    return %c0_i32, %c0_i32_0 : i32, i32
  }
  func.func @transform_3(%arg0: i32) -> (i32, i32) {
    %c0_i32 = arith.constant 0 : i32
    %c0_i32_0 = arith.constant 0 : i32
    %c0_i32_1 = arith.constant 0 : i32
    return %c0_i32, %c0_i32_0 : i32, i32
  }
  func.func @transform_4(%arg0: i32) -> (i32, i32) {
    %c0_i32 = arith.constant 0 : i32
    %c0_i32_0 = arith.constant 0 : i32
    %c0_i32_1 = arith.constant 0 : i32
    return %c0_i32, %c0_i32_0 : i32, i32
  }
  func.func @transform_5(%arg0: i32) -> (i32, i32) {
    %c0_i32 = arith.constant 0 : i32
    %c0_i32_0 = arith.constant 0 : i32
    %c0_i32_1 = arith.constant 0 : i32
    return %c0_i32, %c0_i32_0 : i32, i32
  }
  func.func @transform_6(%arg0: i32) -> (i32, i32) {
    %c0_i32 = arith.constant 0 : i32
    %c0_i32_0 = arith.constant 0 : i32
    %c0_i32_1 = arith.constant 0 : i32
    return %c0_i32, %c0_i32_0 : i32, i32
  }
  func.func @transform_7(%arg0: i32) -> (i32, i32) {
    %c0_i32 = arith.constant 0 : i32
    %c0_i32_0 = arith.constant 0 : i32
    %c0_i32_1 = arith.constant 0 : i32
    return %c0_i32, %c0_i32_0 : i32, i32
  }
  func.func @transform_8(%arg0: i32) -> (i32, i32) {
    %c0_i32 = arith.constant 0 : i32
    %c0_i32_0 = arith.constant 0 : i32
    %c0_i32_1 = arith.constant 0 : i32
    return %c0_i32, %c0_i32_0 : i32, i32
  }
  func.func @transform_9(%arg0: i32) -> (i32, i32) {
    %c0_i32 = arith.constant 0 : i32
    %c0_i32_0 = arith.constant 0 : i32
    return %arg0, %c0_i32 : i32, i32
  }
}

</mosaic_0001>

<bundles_post_ra>
// kernel: tpu_custom_call.1
= control target key start
LH: loop header
LB: loop body
LE: loop exit
PB: predicated region body
PF: predicated region fallthrough
CT: control target
= control target key end

     0   :  { %15 = vsyncpa [#allocation4], 0  ;;  %s560_s0 = inlined_call_operand.hbm [shape: bf16[16,24], index: 0, kind: input, shape index: {}]   ;;  %s561_s1 = inlined_call_operand.vmem [shape: bf16[16,8], index: 1, kind: input, shape index: {}]   ;;  %s562_s2 = inlined_call_operand.vmem [shape: bf16[24,128], index: 2, kind: input, shape index: {}]   ;;  %s563_s3 = inlined_call_operand.vmem [shape: bf16[8,128], index: 3, kind: input, shape index: {}]   ;;  %s564_s4 = inlined_call_operand.vmem [shape: f32[1,128], index: 4, kind: input, shape index: {}]   ;;  %s565_s5 = inlined_call_operand.hbm [shape: bf16[128,128], index: 5, kind: input, shape index: {}]   ;;  %s566_s6 = inlined_call_operand.vmem [shape: f32[1,128], index: 6, kind: input, shape index: {}]   ;;  %s567_s7 = inlined_call_operand.vmem [shape: f32[1,128], index: 7, kind: input, shape index: {}]   ;;  %s568_s8 = inlined_call_operand.<no memory space> [shape: f32[1,1], index: 8, kind: input, shape index: {}]   ;;  %s569_s9 = inlined_call_operand.vmem [shape: f32[16,1], index: 9, kind: output, shape index: {}]  }
   0x1   :  { %16 = vsyncpa [#allocation6], 0  ;;  %s465_s30 = smov [#allocation3]  }
   0x2   :  { %s22_s10 = sshll.u32 %s465_s30, 4  ;;  %s23_s10 = int_to_ptr.vmem [resolvable:$true] %s22_s10 }
   0x3   :  { %s429_s11 = scalar_lea.vmem %s23_s10, 128  ;;  %p434_p1 = scmp.lt.s32.totalorder %s23_s10, %s23_s10 }
   0x4   :  { %p430_p0 = scmp.ne.s32.totalorder %s23_s10, %s429_s11  ;;  %p435_p2 = scmp.lt.s32.totalorder %s429_s11, %s429_s11 }
   0x6   :  { %p436_p3 = por %p435_p2, %p434_p1 }
   0x8   :  { %p437_p4 = pnand %p436_p3, %p430_p0 }
   0xa   :  { %440 = shalt.err (!%p437_p4)
}
   0xb   :  { %s466_s12 = smov 64   ;;  %s467_s13 = smov 4  }
   0xc   :  { %28 = dma.hbm_to_vmem [thread:$0]  %s560_s0, 128, %s23_s10, [#allocation4], %s466_s12, %s466_s12, %s467_s13  }
   0xd   :  { %s468_s16 = smov [#allocation5]  }
   0xe   :  { %s42_s17 = sshll.u32 %s468_s16, 4  ;;  %s43_s17 = int_to_ptr.vmem [resolvable:$true] %s42_s17 }
   0xf   :  { %s449_s18 = scalar_lea.vmem %s43_s17, 1024  ;;  %p454_p6 = scmp.lt.s32.totalorder %s43_s17, %s43_s17 }
  0x10   :  { %p450_p5 = scmp.ne.s32.totalorder %s43_s17, %s449_s18  ;;  %p455_p7 = scmp.lt.s32.totalorder %s449_s18, %s449_s18 }
  0x12   :  { %p456_p8 = por %p455_p7, %p454_p6 }
  0x14   :  { %p457_p9 = pnand %p456_p8, %p450_p5 }
  0x16   :  { %460 = shalt.err (!%p457_p9)
}
  0x17   :  { %48 = dma.hbm_to_vmem [thread:$0]  %s565_s5, 1024, %s43_s17, [#allocation6], %s466_s12, %s466_s12, %s467_s13  }
  0x18   :  { %461 = dma.done.wait [#allocation4], 128  }
  0x19   :  { %462 = vsyncadd [#allocation4], 4294967168 }
  0x1a   :  { %463 = dma.done.wait [#allocation6], 1024  }
  0x1b   :  { %464 = vsyncadd [#allocation6], 4294966272  ;;  %v469_v0 = vmov 0.0   ;;  %vm470_vm0 = vmmov 0   ;;  %vm79_vm1 = vcmask 1043456   ;;  %v410_v4 = vld [vmem:[%s561_s1] sm:$0xff]   ;;  %v326_v44 = vstv %s568_s8 }
  0x1c   :  { %369 = vmatprep.subr.bf16.mxu1 %v469_v0  ;;  %371 = vmatprep.mubr.msk.bf16.mxu1 %vm470_vm0, %v469_v0  ;;  %v69_v1 = vld [vmem:[%s563_s3] sm:$0xf]  ;;  %v409_v2 = vld [vmem:[%s562_s2 + $0x8] ss:$0 sps:$4 sm:$0xff]   ;;  %vm75_vm2 = vcmask 64512   ;;  %v414_v8 = vld [vmem:[#allocation5 + $0x30] sm:$0xff]  }
  0x1d   :  { %383 = vmatprep.subr.bf16.mxu0 %v469_v0  ;;  %399 = vmatprep.mubr.msk.bf16.mxu0 %vm470_vm0, %v469_v0  ;;  %v81_v3 = vsel %vm79_vm1, %v69_v1, 0  ;;  %v143_v5 = vsel %vm79_vm1, %v409_v2, 0  ;;  %v413_v6 = vld [vmem:[#allocation5 + $0x38] sm:$0xff]   ;;  %vm138_vm3 = vcmask 195584   ;;  %v415_v10 = vld [vmem:[#allocation5 + $0x28] sm:$0xff]   ;;  %v416_v11 = vld [vmem:[#allocation5 + $0x20] sm:$0xff]  }
  0x1e   :  { %370 = vmatpush3.bf16.msra.mxu1 %v81_v3  ;;  %v411_v7 = vld [vmem:[%s562_s2] sm:$0xff]   ;;  %384 = vmatpush3.bf16.msra.mxu0 %v413_v6  ;;  %v418_v13 = vld [vmem:[#allocation5 + $0x10] sm:$0xff]   ;;  %v419_v14 = vld [vmem:[#allocation5 + $0x8] sm:$0xff]   ;;  %vm329_vm4 = vcmask 7168  }
  0x1f   :  { %375 = vmatprep.subr.bf16.mxu1 %v469_v0  ;;  %v412_v9 = vld [vmem:[#allocation3] sm:$0xff]   ;;  %385 = vmatprep.subr.bf16.mxu0 %v469_v0  ;;  %v420_v15 = vld [vmem:[#allocation5] sm:$0xff]  }
  0x20   :  { %v417_v12 = vld [vmem:[#allocation5 + $0x18] sm:$0xff]  }
  0x21   :  { %372 = vmatmul.mubr.msk.bf16.vlgmr.msra.gmra.mxu1 %vm75_vm2, %v410_v4  ;;  %v344_v22 = vld [vmem:[%s564_s4] ss:$0 sm:$0xff] }
  0x22   :  { %376 = vmatpush3.bf16.msra.mxu1 %v143_v5  ;;  %379 = vmatprep.mubr.msk.bf16.mxu1 %vm470_vm0, %v469_v0  ;;  %v345_v32 = vld [vmem:[%s566_s6] ss:$0 sm:$0xff] }
  0x23   :  { %377 = vmatprep.subr.bf16.mxu1 %v469_v0  ;;  %386 = vmatpush3.bf16.msra.mxu0 %v414_v8  ;;  %v354_v36 = vld [vmem:[%s567_s7] ss:$0 sm:$0xff] }
  0x24   :  { %387 = vmatprep.subr.bf16.mxu0 %v469_v0 }
  0x26   :  { %378 = vmatpush3.bf16.msra.mxu1 %v411_v7 }
  0x27   :  { %388 = vmatpush3.bf16.msra.mxu0 %v415_v10 }
  0x28   :  { %389 = vmatprep.subr.bf16.mxu0 %v469_v0 }
  0x29   :  { %380 = vmatmul.mubr.msk.bf16.vlgmr.msra.gmra.mxu1 %vm138_vm3, %v412_v9 }
  0x2b   :  { %390 = vmatpush3.bf16.msra.mxu0 %v416_v11 }
  0x2c   :  { %391 = vmatprep.subr.bf16.mxu0 %v469_v0 }
  0x2f   :  { %392 = vmatpush3.bf16.msra.mxu0 %v417_v12 }
  0x30   :  { %393 = vmatprep.subr.bf16.mxu0 %v469_v0 }
  0x33   :  { %394 = vmatpush3.bf16.msra.mxu0 %v418_v13 }
  0x34   :  { %395 = vmatprep.subr.bf16.mxu0 %v469_v0 }
  0x37   :  { %396 = vmatpush3.bf16.msra.mxu0 %v419_v14 }
  0x38   :  { %397 = vmatprep.subr.bf16.mxu0 %v469_v0 }
  0x3b   :  { %398 = vmatpush3.bf16.msra.mxu0 %v420_v15 }
  0xe1   :  { %v117_v16 = vpop.f32.mrf.mxu1 }
  0xe3   :  { %v373_v17 = vpop.f32.mrf.mxu1 }
  0xe5   :  { %v120_v18 = vpop.f32.mrf.mxu1 }
  0xe7   :  { %v374_v19 = vpop.f32.mrf.mxu1 }
  0xe9   :  { %v179_v20 = vpop.f32.mrf.mxu1 }
  0xea   :  { %v180_v21 = vadd.f32 %v179_v20, %v117_v16 }
  0xeb   :  { %v381_v23 = vpop.f32.mrf.mxu1 }
  0xec   :  { %v193_v25 = vadd.f32 %v344_v22, %v180_v21 }
  0xed   :  { %v182_v24 = vpop.f32.mrf.mxu1 }
  0xee   :  { %v183_v26 = vadd.f32 %v182_v24, %v120_v18  ;;  %v195_v29 = vmax.f32 %v193_v25, 0.0 }
  0xef   :  { %v382_v27 = vpop.f32.mrf.mxu1 }
  0xf0   :  { %v194_v28 = vadd.f32 %v344_v22, %v183_v26 }
  0xf2   :  { %v196_v30 = vmax.f32 %v194_v28, 0.0 }
  0xf4   :  { %v197_v31 = vpack.c.bf16 %v196_v30, %v195_v29 }
  0xf6   :  { %400 = vmatmul.mubr.bf16.vlgmr.msra.gmra.mxu0 %v197_v31 }
 0x1b6   :  { %v303_v33 = vpop.f32.mrf.mxu0 }
 0x1b7   :  { %v304_v34 = vadd.f32 %v345_v32, %v303_v33 }
 0x1b8   :  { %v401_v35 = vpop.f32.mrf.mxu0 }
 0x1b9   :  { %v310_v37 = vmax.f32 %v304_v34, 0.0 }
 0x1ba   :  { %v306_v38 = vpop.f32.mrf.mxu0 }
 0x1bb   :  { %v307_v39 = vadd.f32 %v345_v32, %v306_v38  ;;  %v319_v40 = vmul.f32 %v354_v36, %v310_v37 }
 0x1bc   :  { %v402_v41 = vpop.f32.mrf.mxu0 }
 0x1bd   :  { %v311_v42 = vmax.f32 %v307_v39, 0.0  ;;  %321 = vadd.xlane.f32.xlu0 %v319_v40 }
 0x1bf   :  { %v320_v43 = vmul.f32 %v354_v36, %v311_v42 }
 0x1c1   :  { %323 = vadd.xlane.f32.xlu0 %v320_v43 }
 0x246   :  { %v322_v45 = vpop.xlane.xlu0 %321 }
 0x247   :  { %v327_v46 = vadd.f32 %v326_v44, %v322_v45 }
 0x249   :  { %330 = vst.msk [vmem:[%s569_s9] sm:$0xff] %vm329_vm4, %v327_v46 }
 0x24a   :  { %v324_v47 = vpop.xlane.xlu0 %323 }
 0x24b   :  { %v328_v48 = vadd.f32 %v326_v44, %v324_v47 }
 0x24d   :  { %331 = vst.msk [vmem:[%s569_s9 + $0x8] sm:$0xff] %vm329_vm4, %v328_v48 }
 0x24e   :  { %336 = vsyncpa [#allocation4], 1 }
 0x24f   :  { %337 = vsyncpa [#allocation6], 1 }

</bundles_post_ra>
